<compile_context>
chip_gen: v7x
topology: tpu7x:2x2x1
jax: 0.10.0
libtpu: 0.0.40
codegen_flags: <defaults>
</compile_context>

<pallas_src>
import jax
import jax.numpy as jnp
from jax.experimental import pallas as pl
from jax.experimental.pallas import tpu as pltpu


def _round_up(x, m):
    return ((x + m - 1) // m) * m


# ----------------------------------------------------------------------------
# Fused kernel: whole FrontDoor forward over one batch tile.
# refs = [x, (W,b) per packed intermediate layer ..., (W_head, b_head), out]
# ----------------------------------------------------------------------------
def _make_fused_kernel(num_intermediate):
    def kernel(x_ref, *refs):
        out_ref = refs[-1]
        h = x_ref[...].astype(jnp.float32)
        # packed intermediate layers: h = tanh(h @ W + b)
        for l in range(num_intermediate):
            w = refs[2 * l][...]
            b = refs[2 * l + 1][...]
            h = jnp.tanh(
                jnp.dot(h, w, preferred_element_type=jnp.float32) + b)
        # merged loc/scale heads of all four MLPs -> one [tb, 8] slab
        wh = refs[2 * num_intermediate][...]
        bh = refs[2 * num_intermediate + 1][...]
        out_ref[...] = (
            jnp.dot(h, wh, preferred_element_type=jnp.float32) + bh
        ).astype(out_ref.dtype)

    return kernel


# ----------------------------------------------------------------------------
# Parameter setup (deterministic, mimics nn.Linear's U(-1/sqrt(fan_in), ...))
# ----------------------------------------------------------------------------
def _init_linear(key, fan_in, fan_out, use_bias, dtype=jnp.float32):
    kw, kb = jax.random.split(key)
    bound = 1.0 / (fan_in ** 0.5)
    w = jax.random.uniform(kw, (fan_in, fan_out), dtype, -bound, bound)
    if use_bias:
        b = jax.random.uniform(kb, (1, fan_out), dtype, -bound, bound)
    else:
        b = jnp.zeros((1, fan_out), dtype)
    return w, b


def init_location_scale_mlp(key, arch, root=False):
    """arch = [din, h1, ..., hk]; returns [(W,b) per intermediate, loc, scale]."""
    keys = jax.random.split(key, len(arch) + 1)
    params = []
    for i in range(len(arch) - 1):
        params.append(_init_linear(keys[i], arch[i], arch[i + 1],
                                   use_bias=not root))
    params.append(_init_linear(keys[-2], arch[-1], 1, use_bias=not root))  # loc
    params.append(_init_linear(keys[-1], arch[-1], 1, use_bias=not root))  # scale
    return params


def init_front_door(key, arch):
    arch = list(arch) + [1]
    k0, k1, k2, k3 = jax.random.split(key, 4)
    return {
        "x_mlp": init_location_scale_mlp(k0, [1] + arch, root=True),
        "z_mlp": init_location_scale_mlp(k1, [1] + arch, root=False),
        "y_mlp": init_location_scale_mlp(k2, [1] + arch, root=False),
        "y_aux_mlp": init_location_scale_mlp(k3, [2] + arch, root=False),
    }


# ----------------------------------------------------------------------------
# Block-diagonal packing of the four MLPs (done once, outside the kernel).
# ----------------------------------------------------------------------------
def _block_diag(blocks):
    rows = sum(b.shape[0] for b in blocks)
    cols = sum(b.shape[1] for b in blocks)
    out = jnp.zeros((rows, cols), blocks[0].dtype)
    r = c = 0
    for b in blocks:
        out = out.at[r:r + b.shape[0], c:c + b.shape[1]].set(b)
        r += b.shape[0]
        c += b.shape[1]
    return out


def pack_front_door(params):
    """Pack the four MLPs into one block-diagonal weight chain.

    Returns a list [(W, b), ...] of `num_intermediate` packed hidden layers
    followed by one packed (W_head, b_head) whose 8 output columns are
    [loc_X, scale_X, loc_Z, scale_Z, loc_Y, scale_Y, loc_aux_Y, scale_aux_Y].
    """
    mlps = [params["x_mlp"], params["z_mlp"], params["y_mlp"],
            params["y_aux_mlp"]]
    num_intermediate = len(mlps[0]) - 2

    packed = []
    for l in range(num_intermediate):
        w = _block_diag([m[l][0] for m in mlps])
        b = jnp.concatenate([m[l][1] for m in mlps], axis=1)
        packed.append((w, b))

    head_w, head_b = [], []
    for m in mlps:
        wl, bl = m[-2]
        ws, bs = m[-1]
        head_w.append(jnp.concatenate([wl, ws], axis=1))   # [arch[-1], 2]
        head_b.append(jnp.concatenate([bl, bs], axis=1))   # [1, 2]
    packed.append((_block_diag(head_w), jnp.concatenate(head_b, axis=1)))
    return packed


# ----------------------------------------------------------------------------
# FrontDoor forward: one fused pallas_call over batch tiles.
# ----------------------------------------------------------------------------
def front_door_forward(x, packed, *, tb=256):
    n = x.shape[0]
    dtype = x.dtype
    num_intermediate = len(packed) - 1
    n_out = packed[-1][0].shape[1]            # 8 output columns
    din_packed = packed[0][0].shape[0]        # 1 + 1 + 1 + 2 = 5

    # Packed input columns: [ones (x_mlp), x0 (z_mlp), x1 (y_mlp), x0, x1 (aux)]
    ones = jnp.ones((n, 1), dtype)
    xp = jnp.concatenate([ones, x[:, 0:1], x[:, 1:2], x[:, 0:2]], axis=1)

    # Batch tiling: tile rows must be a multiple of 8 (sublanes); pad instead
    # of asserting divisibility.
    tb = min(tb, _round_up(n, 8))
    tb = _round_up(tb, 8)
    n_pad = _round_up(n, tb)
    if n_pad != n:
        xp = jnp.pad(xp, ((0, n_pad - n), (0, 0)))

    args = [xp]
    in_specs = [pl.BlockSpec((tb, din_packed), lambda i: (i, 0))]
    for w, b in packed:
        args += [w, b]
        in_specs += [pl.BlockSpec(w.shape, lambda i: (0, 0)),
                     pl.BlockSpec(b.shape, lambda i: (0, 0))]

    out = pl.pallas_call(
        _make_fused_kernel(num_intermediate),
        grid=(n_pad // tb,),
        in_specs=in_specs,
        out_specs=pl.BlockSpec((tb, n_out), lambda i: (i, 0)),
        out_shape=jax.ShapeDtypeStruct((n_pad, n_out), dtype),
        compiler_params=pltpu.CompilerParams(
            dimension_semantics=("parallel",)),
    )(*args)

    out = out[:n]
    # Return order matches the PyTorch module.
    return tuple(out[:, j:j + 1] for j in range(n_out))


# ----------------------------------------------------------------------------
# Pure-JAX reference (unpacked, per-MLP) for correctness checking.
# ----------------------------------------------------------------------------
def _ref_mlp(x, params):
    h = x
    for w, b in params[:-2]:
        h = jnp.tanh(h @ w + b)
    wl, bl = params[-2]
    ws, bs = params[-1]
    return h @ wl + bl, h @ ws + bs


def _ref_front_door(x, params):
    n = x.shape[0]
    const = jnp.ones((n, 1), x.dtype)
    out = []
    out += list(_ref_mlp(const, params["x_mlp"]))
    out += list(_ref_mlp(x[:, 0:1], params["z_mlp"]))
    out += list(_ref_mlp(x[:, 1:2], params["y_mlp"]))
    out += list(_ref_mlp(x[:, 0:2], params["y_aux_mlp"]))
    return tuple(out)


if __name__ == "__main__":
    key = jax.random.PRNGKey(0)
    k_param, k_x = jax.random.split(key)

    ARCH = [32, 32]            # module appends [1] -> hidden dims [32, 32, 1]
    N = 16                     # batch
    x = jax.random.normal(k_x, (N, 2), dtype=jnp.float32)

    params = init_front_door(k_param, ARCH)
    packed = pack_front_door(params)          # one-time weight packing

    outs = front_door_forward(x, packed)
    outs = jax.block_until_ready(outs)

    refs = _ref_front_door(x, params)
    for o, r in zip(outs, refs):
        assert o.shape == (N, 1)
        assert jnp.allclose(o, r, atol=1e-5, rtol=1e-5)

    print("KERNEL_OK")
</pallas_src>

<mosaic_0001>
module attributes {stable_mosaic.version = 11 : i64} {
  func.func @kernel(%arg0: i32, %arg1: memref<16x5xf32, #tpu.memory_space<vmem>>, %arg2: memref<5x128xf32, #tpu.memory_space<vmem>>, %arg3: memref<1x128xf32, #tpu.memory_space<vmem>>, %arg4: memref<128x128xf32, #tpu.memory_space<vmem>>, %arg5: memref<1x128xf32, #tpu.memory_space<vmem>>, %arg6: memref<128x4xf32, #tpu.memory_space<vmem>>, %arg7: memref<1x4xf32, #tpu.memory_space<vmem>>, %arg8: memref<4x8xf32, #tpu.memory_space<vmem>>, %arg9: memref<1x8xf32, #tpu.memory_space<vmem>>, %arg10: memref<16x8xf32, #tpu.memory_space<vmem>>) attributes {dimension_semantics = [#tpu.dimension_semantics<parallel>], iteration_bounds = array<i64: 1>, scalar_prefetch = 0 : i64, scratch_operands = 0 : i64, tpu.core_type = #tpu.core_type<tc>, window_params = [{transform_indices = @transform_0, window_bounds = array<i64: 16, 5>}, {pipeline_mode = #tpu.pipeline_mode<synchronous>, transform_indices = @transform_1, window_bounds = array<i64: 5, 128>}, {pipeline_mode = #tpu.pipeline_mode<synchronous>, transform_indices = @transform_2, window_bounds = array<i64: 1, 128>}, {pipeline_mode = #tpu.pipeline_mode<synchronous>, transform_indices = @transform_3, window_bounds = array<i64: 128, 128>}, {pipeline_mode = #tpu.pipeline_mode<synchronous>, transform_indices = @transform_4, window_bounds = array<i64: 1, 128>}, {pipeline_mode = #tpu.pipeline_mode<synchronous>, transform_indices = @transform_5, window_bounds = array<i64: 128, 4>}, {pipeline_mode = #tpu.pipeline_mode<synchronous>, transform_indices = @transform_6, window_bounds = array<i64: 1, 4>}, {pipeline_mode = #tpu.pipeline_mode<synchronous>, transform_indices = @transform_7, window_bounds = array<i64: 4, 8>}, {pipeline_mode = #tpu.pipeline_mode<synchronous>, transform_indices = @transform_8, window_bounds = array<i64: 1, 8>}, {transform_indices = @transform_9, window_bounds = array<i64: 16, 8>}]} {
    %c0 = arith.constant 0 : index
    %c0_0 = arith.constant 0 : index
    %0 = vector.load %arg1[%c0, %c0_0] : memref<16x5xf32, #tpu.memory_space<vmem>>, vector<16x5xf32>
    %c0_1 = arith.constant 0 : index
    %c0_2 = arith.constant 0 : index
    %1 = vector.load %arg2[%c0_1, %c0_2] : memref<5x128xf32, #tpu.memory_space<vmem>>, vector<5x128xf32>
    %c0_3 = arith.constant 0 : index
    %c0_4 = arith.constant 0 : index
    %2 = vector.load %arg3[%c0_3, %c0_4] : memref<1x128xf32, #tpu.memory_space<vmem>>, vector<1x128xf32>
    %cst = arith.constant dense<0.000000e+00> : vector<16x128xf32>
    %3 = tpu.matmul %0, %1, %cst {dimension_numbers = #tpu.dot_dimension_numbers<[1], [0], [0], [1], [0, 0, 1, 1], [], []>} : vector<16x5xf32>, vector<5x128xf32>, vector<16x128xf32> -> vector<16x128xf32>
    %4 = vector.broadcast %2 : vector<1x128xf32> to vector<16x128xf32>
    %5 = arith.addf %3, %4 : vector<16x128xf32>
    %6 = math.tanh %5 : vector<16x128xf32>
    %c0_5 = arith.constant 0 : index
    %c0_6 = arith.constant 0 : index
    %7 = vector.load %arg4[%c0_5, %c0_6] : memref<128x128xf32, #tpu.memory_space<vmem>>, vector<128x128xf32>
    %c0_7 = arith.constant 0 : index
    %c0_8 = arith.constant 0 : index
    %8 = vector.load %arg5[%c0_7, %c0_8] : memref<1x128xf32, #tpu.memory_space<vmem>>, vector<1x128xf32>
    %cst_9 = arith.constant dense<0.000000e+00> : vector<16x128xf32>
    %9 = tpu.matmul %6, %7, %cst_9 {dimension_numbers = #tpu.dot_dimension_numbers<[1], [0], [0], [1], [0, 0, 1, 1], [], []>} : vector<16x128xf32>, vector<128x128xf32>, vector<16x128xf32> -> vector<16x128xf32>
    %10 = vector.broadcast %8 : vector<1x128xf32> to vector<16x128xf32>
    %11 = arith.addf %9, %10 : vector<16x128xf32>
    %12 = math.tanh %11 : vector<16x128xf32>
    %c0_10 = arith.constant 0 : index
    %c0_11 = arith.constant 0 : index
    %13 = vector.load %arg6[%c0_10, %c0_11] : memref<128x4xf32, #tpu.memory_space<vmem>>, vector<128x4xf32>
    %c0_12 = arith.constant 0 : index
    %c0_13 = arith.constant 0 : index
    %14 = vector.load %arg7[%c0_12, %c0_13] : memref<1x4xf32, #tpu.memory_space<vmem>>, vector<1x4xf32>
    %cst_14 = arith.constant dense<0.000000e+00> : vector<16x4xf32>
    %15 = tpu.matmul %12, %13, %cst_14 {dimension_numbers = #tpu.dot_dimension_numbers<[1], [0], [0], [1], [0, 0, 1, 1], [], []>} : vector<16x128xf32>, vector<128x4xf32>, vector<16x4xf32> -> vector<16x4xf32>
    %16 = vector.broadcast %14 : vector<1x4xf32> to vector<16x4xf32>
    %17 = arith.addf %15, %16 : vector<16x4xf32>
    %18 = math.tanh %17 : vector<16x4xf32>
    %c0_15 = arith.constant 0 : index
    %c0_16 = arith.constant 0 : index
    %19 = vector.load %arg8[%c0_15, %c0_16] : memref<4x8xf32, #tpu.memory_space<vmem>>, vector<4x8xf32>
    %c0_17 = arith.constant 0 : index
    %c0_18 = arith.constant 0 : index
    %20 = vector.load %arg9[%c0_17, %c0_18] : memref<1x8xf32, #tpu.memory_space<vmem>>, vector<1x8xf32>
    %cst_19 = arith.constant dense<0.000000e+00> : vector<16x8xf32>
    %21 = tpu.matmul %18, %19, %cst_19 {dimension_numbers = #tpu.dot_dimension_numbers<[1], [0], [0], [1], [0, 0, 1, 1], [], []>} : vector<16x4xf32>, vector<4x8xf32>, vector<16x8xf32> -> vector<16x8xf32>
    %22 = vector.broadcast %20 : vector<1x8xf32> to vector<16x8xf32>
    %23 = arith.addf %21, %22 : vector<16x8xf32>
    %c0_20 = arith.constant 0 : index
    %c0_21 = arith.constant 0 : index
    %24 = vector.load %arg10[%c0_20, %c0_21] : memref<16x8xf32, #tpu.memory_space<vmem>>, vector<16x8xf32>
    tpu.vector_store %arg10[%c0_20, %c0_21], %23 {strides = array<i32>} : memref<16x8xf32, #tpu.memory_space<vmem>>, vector<16x8xf32>,
    return
  }
  func.func @transform_0(%arg0: i32) -> (i32, i32) {
    %c0_i32 = arith.constant 0 : i32
    %c0_i32_0 = arith.constant 0 : i32
    return %arg0, %c0_i32 : i32, i32
  }
  func.func @transform_1(%arg0: i32) -> (i32, i32) {
    %c0_i32 = arith.constant 0 : i32
    %c0_i32_0 = arith.constant 0 : i32
    %c0_i32_1 = arith.constant 0 : i32
    return %c0_i32, %c0_i32_0 : i32, i32
  }
  func.func @transform_2(%arg0: i32) -> (i32, i32) {
    %c0_i32 = arith.constant 0 : i32
    %c0_i32_0 = arith.constant 0 : i32
    %c0_i32_1 = arith.constant 0 : i32
    return %c0_i32, %c0_i32_0 : i32, i32
  }
  func.func @transform_3(%arg0: i32) -> (i32, i32) {
    %c0_i32 = arith.constant 0 : i32
    %c0_i32_0 = arith.constant 0 : i32
    %c0_i32_1 = arith.constant 0 : i32
    return %c0_i32, %c0_i32_0 : i32, i32
  }
  func.func @transform_4(%arg0: i32) -> (i32, i32) {
    %c0_i32 = arith.constant 0 : i32
    %c0_i32_0 = arith.constant 0 : i32
    %c0_i32_1 = arith.constant 0 : i32
    return %c0_i32, %c0_i32_0 : i32, i32
  }
  func.func @transform_5(%arg0: i32) -> (i32, i32) {
    %c0_i32 = arith.constant 0 : i32
    %c0_i32_0 = arith.constant 0 : i32
    %c0_i32_1 = arith.constant 0 : i32
    return %c0_i32, %c0_i32_0 : i32, i32
  }
  func.func @transform_6(%arg0: i32) -> (i32, i32) {
    %c0_i32 = arith.constant 0 : i32
    %c0_i32_0 = arith.constant 0 : i32
    %c0_i32_1 = arith.constant 0 : i32
    return %c0_i32, %c0_i32_0 : i32, i32
  }
  func.func @transform_7(%arg0: i32) -> (i32, i32) {
    %c0_i32 = arith.constant 0 : i32
    %c0_i32_0 = arith.constant 0 : i32
    %c0_i32_1 = arith.constant 0 : i32
    return %c0_i32, %c0_i32_0 : i32, i32
  }
  func.func @transform_8(%arg0: i32) -> (i32, i32) {
    %c0_i32 = arith.constant 0 : i32
    %c0_i32_0 = arith.constant 0 : i32
    %c0_i32_1 = arith.constant 0 : i32
    return %c0_i32, %c0_i32_0 : i32, i32
  }
  func.func @transform_9(%arg0: i32) -> (i32, i32) {
    %c0_i32 = arith.constant 0 : i32
    %c0_i32_0 = arith.constant 0 : i32
    return %arg0, %c0_i32 : i32, i32
  }
}

</mosaic_0001>

<bundles_post_ra>
// kernel: tpu_custom_call.1
= control target key start
LH: loop header
LB: loop body
LE: loop exit
PB: predicated region body
PF: predicated region fallthrough
CT: control target
= control target key end

     0   :  { %vm49_vm0 = vcmask 1044480   ;;  %vm42_vm1 = vcmask 39936   ;;  %vm345_vm2 = vcmask 1043456   ;;  %vm338_vm3 = vcmask 31744   ;;  %s815_s1 = inlined_call_operand.vmem [shape: f32[5,128], index: 1, kind: input, shape index: {}]   ;;  %s816_s0 = inlined_call_operand.vmem [shape: f32[16,5], index: 0, kind: input, shape index: {}]   ;;  %s817_s3 = inlined_call_operand.vmem [shape: f32[128,128], index: 3, kind: input, shape index: {}]   ;;  %s818_s5 = inlined_call_operand.vmem [shape: f32[128,4], index: 5, kind: input, shape index: {}]   ;;  %s819_s2 = inlined_call_operand.vmem [shape: f32[1,128], index: 2, kind: input, shape index: {}]   ;;  %s820_s4 = inlined_call_operand.vmem [shape: f32[1,128], index: 4, kind: input, shape index: {}]   ;;  %s821_s7 = inlined_call_operand.vmem [shape: f32[4,8], index: 7, kind: input, shape index: {}]   ;;  %s822_s6 = inlined_call_operand.vmem [shape: f32[1,4], index: 6, kind: input, shape index: {}]   ;;  %s823_s8 = inlined_call_operand.vmem [shape: f32[1,8], index: 8, kind: input, shape index: {}]   ;;  %s824_s9 = inlined_call_operand.vmem [shape: f32[16,8], index: 9, kind: output, shape index: {}]  }
   0x1   :  { %v34_v0 = vld [vmem:[%s815_s1] sm:$0x1f]  ;;  %v33_v2 = vld [vmem:[%s816_s0 + $0x8] sm:$0xff]  ;;  %v132_v5 = vld [vmem:[%s817_s3 + $0x10] sm:$0xff]  ;;  %vm424_vm4 = vcmask 64512  }
   0x2   :  { %v32_v1 = vld [vmem:[%s816_s0] sm:$0xff]  ;;  %483 = vmatprep.subr.msk.mxu0 %vm49_vm0, %v34_v0  ;;  %v131_v4 = vld [vmem:[%s817_s3 + $0x8] sm:$0xff]  ;;  %v133_v7 = vld [vmem:[%s817_s3 + $0x18] sm:$0xff] }
   0x3   :  { %485 = vmatprep.mubr.msk.f32.mxu0 %vm42_vm1, %v32_v1  ;;  %v130_v3 = vld [vmem:[%s817_s3] sm:$0xff]  ;;  %484 = vmatpush3.msk.msra.mxu0 %vm49_vm0, %v34_v0  ;;  %v567_v8 = vpack.c.bf16 %v133_v7, %v132_v5  ;;  %v135_v10 = vld [vmem:[%s817_s3 + $0x28] sm:$0xff]  ;;  %v136_v12 = vld [vmem:[%s817_s3 + $0x30] sm:$0xff] }
   0x4   :  { %v563_v6 = vpack.c.bf16 %v131_v4, %v130_v3  ;;  %486 = vmatmul.mubr.msk.f32.vlgmr.msra.gmra.mrb[0].mxu0 %vm42_vm1, %v33_v2  ;;  %v134_v9 = vld [vmem:[%s817_s3 + $0x20] sm:$0xff]  ;;  %v137_v13 = vld [vmem:[%s817_s3 + $0x38] sm:$0xff]  ;;  %v139_v16 = vld [vmem:[%s817_s3 + $0x48] sm:$0xff] }
   0x5   :  { %v571_v11 = vpack.c.bf16 %v135_v10, %v134_v9  ;;  %v575_v14 = vpack.c.bf16 %v137_v13, %v136_v12  ;;  %v138_v15 = vld [vmem:[%s817_s3 + $0x40] sm:$0xff]  ;;  %v140_v18 = vld [vmem:[%s817_s3 + $0x50] sm:$0xff]  ;;  %v141_v19 = vld [vmem:[%s817_s3 + $0x58] sm:$0xff] }
   0x6   :  { %564 = vmatprep.subr.bf16.mxu1 %v563_v6  ;;  %v579_v17 = vpack.c.bf16 %v139_v16, %v138_v15  ;;  %v583_v20 = vpack.c.bf16 %v141_v19, %v140_v18  ;;  %v142_v21 = vld [vmem:[%s817_s3 + $0x60] sm:$0xff]  ;;  %v143_v22 = vld [vmem:[%s817_s3 + $0x68] sm:$0xff]  ;;  %v144_v23 = vld [vmem:[%s817_s3 + $0x70] sm:$0xff] }
   0x7   :  { %566 = vmatpush3.bf16.msra.mxu1 %v563_v6  ;;  %v587_v24 = vpack.c.bf16 %v143_v22, %v142_v21  ;;  %v145_v25 = vld [vmem:[%s817_s3 + $0x78] sm:$0xff]  ;;  %v230_v27 = vld [vmem:[%s818_s5] sm:$0xff]  ;;  %v231_v28 = vld [vmem:[%s818_s5 + $0x8] sm:$0xff] }
   0x8   :  { %568 = vmatprep.subr.bf16.mxu1 %v567_v8  ;;  %v591_v26 = vpack.c.bf16 %v145_v25, %v144_v23  ;;  %v232_v29 = vld [vmem:[%s818_s5 + $0x10] sm:$0xff]  ;;  %v595_v30 = vpack.c.bf16 %v231_v28, %v230_v27  ;;  %v233_v31 = vld [vmem:[%s818_s5 + $0x18] sm:$0xff]  ;;  %v234_v33 = vld [vmem:[%s818_s5 + $0x20] sm:$0xff] }
   0x9   :  { %v599_v32 = vpack.c.bf16 %v233_v31, %v232_v29  ;;  %v235_v34 = vld [vmem:[%s818_s5 + $0x28] sm:$0xff]  ;;  %v236_v36 = vld [vmem:[%s818_s5 + $0x30] sm:$0xff]  ;;  %v237_v37 = vld [vmem:[%s818_s5 + $0x38] sm:$0xff] }
   0xa   :  { %596 = vmatprep.subr.bf16.mxu0 %v595_v30  ;;  %v603_v35 = vpack.c.bf16 %v235_v34, %v234_v33  ;;  %v607_v38 = vpack.c.bf16 %v237_v37, %v236_v36  ;;  %v431_v39 = vld [vmem:[%s819_s2] ss:$0 sm:$0xff]  ;;  %v239_v47 = vld [vmem:[%s818_s5 + $0x48] sm:$0xff]  ;;  %v240_v49 = vld [vmem:[%s818_s5 + $0x50] sm:$0xff] }
   0xb   :  { %570 = vmatpush3.bf16.msra.mxu1 %v567_v8  ;;  %598 = vmatpush3.bf16.msra.mxu0 %v595_v30  ;;  %v238_v46 = vld [vmem:[%s818_s5 + $0x40] sm:$0xff]  ;;  %v241_v50 = vld [vmem:[%s818_s5 + $0x58] sm:$0xff]  ;;  %v243_v53 = vld [vmem:[%s818_s5 + $0x68] sm:$0xff] }
   0xc   :  { %572 = vmatprep.subr.bf16.mxu1 %v571_v11  ;;  %600 = vmatprep.subr.bf16.mxu0 %v599_v32  ;;  %v611_v48 = vpack.c.bf16 %v239_v47, %v238_v46  ;;  %v615_v51 = vpack.c.bf16 %v241_v50, %v240_v49  ;;  %v242_v52 = vld [vmem:[%s818_s5 + $0x60] sm:$0xff]  ;;  %v244_v54 = vld [vmem:[%s818_s5 + $0x70] sm:$0xff]  ;;  %v245_v56 = vld [vmem:[%s818_s5 + $0x78] sm:$0xff] }
   0xd   :  { %v619_v55 = vpack.c.bf16 %v243_v53, %v242_v52  ;;  %v623_v57 = vpack.c.bf16 %v245_v56, %v244_v54  ;;  %v435_v58 = vld [vmem:[%s820_s4] ss:$0 sm:$0xff] }
   0xe   :  { %v330_v1 = vld [vmem:[%s821_s7] sm:$0xf] }
   0xf   :  { %574 = vmatpush3.bf16.msra.mxu1 %v571_v11  ;;  %602 = vmatpush3.bf16.msra.mxu0 %v599_v32  ;;  %v436_v2 = vld [vmem:[%s822_s6] ss:$0 sm:$0xff] }
  0x10   :  { %576 = vmatprep.subr.bf16.mxu1 %v575_v14  ;;  %604 = vmatprep.subr.bf16.mxu0 %v603_v35  ;;  %v437_v9 = vld [vmem:[%s823_s8] ss:$0 sm:$0xff] }
  0x13   :  { %578 = vmatpush3.bf16.msra.mxu1 %v575_v14  ;;  %606 = vmatpush3.bf16.msra.mxu0 %v603_v35 }
  0x14   :  { %580 = vmatprep.subr.bf16.mxu1 %v579_v17  ;;  %608 = vmatprep.subr.bf16.mxu0 %v607_v38 }
  0x17   :  { %582 = vmatpush3.bf16.msra.mxu1 %v579_v17  ;;  %610 = vmatpush3.bf16.msra.mxu0 %v607_v38 }
  0x18   :  { %584 = vmatprep.subr.bf16.mxu1 %v583_v20  ;;  %612 = vmatprep.subr.bf16.mxu0 %v611_v48 }
  0x1b   :  { %586 = vmatpush3.bf16.msra.mxu1 %v583_v20  ;;  %614 = vmatpush3.bf16.msra.mxu0 %v611_v48 }
  0x1c   :  { %588 = vmatprep.subr.bf16.mxu1 %v587_v24  ;;  %616 = vmatprep.subr.bf16.mxu0 %v615_v51 }
  0x1f   :  { %590 = vmatpush3.bf16.msra.mxu1 %v587_v24  ;;  %618 = vmatpush3.bf16.msra.mxu0 %v615_v51 }
  0x20   :  { %592 = vmatprep.subr.bf16.mxu1 %v591_v26  ;;  %620 = vmatprep.subr.bf16.mxu0 %v619_v55 }
  0x23   :  { %594 = vmatpush3.bf16.msra.mxu1 %v591_v26  ;;  %622 = vmatpush3.bf16.msra.mxu0 %v619_v55 }
  0x24   :  { %624 = vmatprep.subr.bf16.mxu0 %v623_v57  ;;  %558 = vmatprep.subr.msk.mxu1 %vm345_vm2, %v330_v1 }
  0x27   :  { %626 = vmatpush3.bf16.msra.mxu0 %v623_v57 }
  0xd7   :  { %v487_v40 = vpop.f32.mrb[0].mxu0 }
  0xd8   :  { %v125_v41 = vadd.f32 %v487_v40, %v431_v39  ;;  %v119_v42 = vpop.f32.mrb[1].mxu0 }
  0xd9   :  { %v120_v43 = vadd.f32 %v431_v39, %v119_v42 }
  0xdb   :  { %627 = vtanh.f32 %v120_v43 }
  0xdc   :  { %629 = vtanh.f32 %v125_v41 }
  0xe5   :  { %v628_v44 = vpop.eup %627 }
  0xe6   :  { %v630_v45 = vpop.eup %629  ;;  %520 = vmatprep.mubr.f32.mxu1 %v628_v44 }
  0xe7   :  { %521 = vmatmul.mubr.f32.vlgmr.msra.gmra.mrb[0].mxu1 %v630_v45 }
  0xe8   :  { %559 = vmatpush3.msk.msra.mxu1 %vm345_vm2, %v330_v1 }
 0x1ba   :  { %v522_v59 = vpop.f32.mrb[0].mxu1 }
 0x1bb   :  { %v225_v60 = vadd.f32 %v522_v59, %v435_v58  ;;  %v219_v61 = vpop.f32.mrb[1].mxu1 }
 0x1bc   :  { %v220_v62 = vadd.f32 %v435_v58, %v219_v61 }
 0x1be   :  { %631 = vtanh.f32 %v220_v62 }
 0x1bf   :  { %633 = vtanh.f32 %v225_v60 }
 0x1c8   :  { %v632_v63 = vpop.eup %631 }
 0x1c9   :  { %v634_v0 = vpop.eup %633  ;;  %555 = vmatprep.mubr.f32.mxu0 %v632_v63 }
 0x1ca   :  { %556 = vmatmul.mubr.f32.vlgmr.msra.gmra.mrb[2].mxu0 %v634_v0 }
 0x29d   :  { %v557_v3 = vpop.f32.mrb[2].mxu0 }
 0x29e   :  { %v325_v4 = vadd.f32 %v557_v3, %v436_v2  ;;  %v319_v5 = vpop.f32.mrb[3].mxu0 }
 0x29f   :  { %v320_v6 = vadd.f32 %v436_v2, %v319_v5 }
 0x2a1   :  { %635 = vtanh.f32 %v320_v6 }
 0x2a2   :  { %637 = vtanh.f32 %v325_v4 }
 0x2ab   :  { %v636_v7 = vpop.eup %635 }
 0x2ac   :  { %v638_v8 = vpop.eup %637  ;;  %560 = vmatprep.mubr.msk.f32.mxu1 %vm338_vm3, %v636_v7 }
 0x2ad   :  { %561 = vmatmul.mubr.msk.f32.vlgmr.msra.gmra.mrb[2].mxu1 %vm338_vm3, %v638_v8 }
 0x380   :  { %v562_v10 = vpop.f32.mrb[2].mxu1 }
 0x381   :  { %v421_v11 = vadd.f32 %v562_v10, %v437_v9  ;;  %v415_v12 = vpop.f32.mrb[3].mxu1 }
 0x382   :  { %v416_v13 = vadd.f32 %v437_v9, %v415_v12 }
 0x383   :  { %426 = vst.msk [vmem:[%s824_s9 + $0x8] sm:$0xff] %vm424_vm4, %v421_v11 }
 0x384   :  { %425 = vst.msk [vmem:[%s824_s9] sm:$0xff] %vm424_vm4, %v416_v13 }

</bundles_post_ra>
